<compile_context>
chip_gen: v6e
topology: v6e:2x2x1
jax: 0.10.0
libtpu: 0.0.40
codegen_flags: <defaults>
</compile_context>

<pallas_src>
import functools

import jax
import jax.numpy as jnp
from jax.experimental import pallas as pl
from jax.experimental.pallas import tpu as pltpu


def _round_up(x, m):
    return ((x + m - 1) // m) * m


def _pick_tiles(n):
    """Return (n_pad, tm, tk) with n_pad % tm == 0 and n_pad % tk == 0."""
    if n <= 512:
        # Small graphs: single tile, pad only to the 128-lane granule.
        n_pad = _round_up(max(n, 1), 128)
        return n_pad, n_pad, n_pad
    n_pad = _round_up(n, 512)          # padding waste stays small
    tk = 512                           # 512 KiB int8 adj tile per TM=1024 row block
    n1024 = n_pad // 1024
    if n_pad % 1024 == 0 and n1024 >= 2 and n1024 % 2 == 0:
        tm = 1024                      # big row tile, even #blocks for 2 TCs (v7x)
    else:
        tm = 512
    return n_pad, tm, tk


# --------------------------------------------------------------------------
# Kernel 1: skinny feature transform  Y = d^-1/2 . (X @ W)   (computed once)
# --------------------------------------------------------------------------
def _transform_kernel(x_ref, dinv_ref, w_ref, y_ref):
    xw = jnp.dot(x_ref[...], w_ref[...], preferred_element_type=jnp.float32)
    y_ref[...] = (xw * dinv_ref[...]).astype(y_ref.dtype)


def _feature_transform(x, dinv, w, *, tn, out_dtype):
    n_pad, f_in = x.shape
    f_out = w.shape[1]
    return pl.pallas_call(
        _transform_kernel,
        out_shape=jax.ShapeDtypeStruct((n_pad, f_out), out_dtype),
        grid_spec=pltpu.PrefetchScalarGridSpec(
            num_scalar_prefetch=0,
            grid=(n_pad // tn,),
            in_specs=[
                pl.BlockSpec((tn, f_in), lambda i: (i, 0)),      # X rows
                pl.BlockSpec((tn, 1), lambda i: (i, 0)),         # d^-1/2 rows
                pl.BlockSpec((f_in, f_out), lambda i: (0, 0)),   # W (resident)
            ],
            out_specs=pl.BlockSpec((tn, f_out), lambda i: (i, 0)),
        ),
        compiler_params=pltpu.CompilerParams(
            dimension_semantics=("parallel",)),
    )(x, dinv, w)


# --------------------------------------------------------------------------
# Kernel 2: neighbour aggregation  out = epilogue(d^-1/2 . (A @ Y) + b)
# --------------------------------------------------------------------------
def _aggregate_kernel(adj_ref, y_ref, dinv_ref, b_ref, out_ref, acc_ref, *,
                      tk, y_resident, epilogue):
    k = pl.program_id(1)

    @pl.when(k == 0)
    def _():
        acc_ref[...] = jnp.zeros_like(acc_ref)

    if y_resident:
        start = pl.multiple_of(k * tk, tk)
        y = y_ref[pl.ds(start, tk), :]
    else:
        y = y_ref[...]

    # int8 (or bf16) adj tile is cast up to bf16 on the VPU; f32 MXU accumulate.
    acc_ref[...] += jnp.dot(adj_ref[...].astype(y.dtype), y,
                            preferred_element_type=jnp.float32)

    @pl.when(k == pl.num_programs(1) - 1)
    def _():
        # Post-aggregation row scaling + bias (added exactly once), in f32.
        h = acc_ref[...] * dinv_ref[...] + b_ref[...]
        if epilogue == "relu":
            out_ref[...] = jnp.maximum(h, 0.0).astype(out_ref.dtype)
        else:  # log_softmax over lanes; padded class lanes carry a -1e30 bias.
            m = jnp.max(h, axis=1, keepdims=True)
            s = h - m
            lse = jnp.log(jnp.sum(jnp.exp(s), axis=1, keepdims=True))
            out_ref[...] = (s - lse).astype(out_ref.dtype)


def _gcn_aggregate(adj_p, y, dinv, b_p, *, tm, tk, epilogue, out_dtype,
                   y_resident):
    n_pad = adj_p.shape[0]
    f_out = y.shape[1]
    grid = (n_pad // tm, n_pad // tk)

    adj_index_map = lambda i, k: (i, k)
    adj_spec = pl.BlockSpec((tm, tk), adj_index_map)
    if grid[1] >= 3 and hasattr(pl, "Buffered"):
        # The kernel is HBM-bound on the adj stream; a third buffer smooths
        # DMA latency jitter at small VMEM cost.
        try:
            adj_spec = pl.BlockSpec((tm, tk), adj_index_map,
                                    pipeline_mode=pl.Buffered(3))
        except TypeError:
            adj_spec = pl.BlockSpec((tm, tk), adj_index_map)

    if y_resident:
        y_spec = pl.BlockSpec((n_pad, f_out), lambda i, k: (0, 0))   # VMEM resident
    else:
        y_spec = pl.BlockSpec((tk, f_out), lambda i, k: (k, 0))

    kernel = functools.partial(_aggregate_kernel, tk=tk,
                               y_resident=y_resident, epilogue=epilogue)
    return pl.pallas_call(
        kernel,
        out_shape=jax.ShapeDtypeStruct((n_pad, f_out), out_dtype),
        grid_spec=pltpu.PrefetchScalarGridSpec(
            num_scalar_prefetch=0,
            grid=grid,
            in_specs=[
                adj_spec,                                       # adj tile (int8)
                y_spec,                                         # Y = dinv.(XW)
                pl.BlockSpec((tm, 1), lambda i, k: (i, 0)),     # d^-1/2 (out rows)
                pl.BlockSpec((1, f_out), lambda i, k: (0, 0)),  # bias (resident)
            ],
            out_specs=pl.BlockSpec((tm, f_out), lambda i, k: (i, 0)),
            scratch_shapes=[pltpu.VMEM((tm, f_out), jnp.float32)],
        ),
        compiler_params=pltpu.CompilerParams(
            dimension_semantics=("parallel", "arbitrary")),
    )(adj_p, y, dinv, b_p)


# --------------------------------------------------------------------------
# Full model forward
# --------------------------------------------------------------------------
def gcn_model_forward(adj, x, deg, w1, b1, w2, b2, *, adj_dtype=jnp.int8):
    """adj: (N,N) (0/1), x: (N,F), deg: (N,) -> (N, num_classes) f32 log-probs.

    For weighted (non-binary) adjacency pass adj_dtype=jnp.bfloat16.
    """
    n = adj.shape[0]
    f_in = x.shape[1]
    hidden = w1.shape[1]
    num_classes = w2.shape[1]

    lane = 128
    n_pad, tm, tk = _pick_tiles(n)
    f_pad = _round_up(f_in, lane)
    h_pad = _round_up(hidden, lane)
    c_pad = _round_up(num_classes, lane)
    f32, bf16 = jnp.float32, jnp.bfloat16

    # 1-byte adjacency stream (exact for 0/1 adjacency).
    adj_p = jnp.zeros((n_pad, n_pad), adj_dtype).at[:n, :n].set(
        adj.astype(adj_dtype))
    x_p = jnp.zeros((n_pad, f_pad), bf16).at[:n, :f_in].set(x.astype(bf16))
    # Padded nodes get degree 1 (their adjacency rows/cols are all zero anyway).
    deg_p = jnp.ones((n_pad,), f32).at[:n].set(deg.astype(f32))
    dinv = jax.lax.rsqrt(jnp.maximum(deg_p, 1e-12)).reshape(n_pad, 1)

    w1_p = jnp.zeros((f_pad, h_pad), bf16).at[:f_in, :hidden].set(w1.astype(bf16))
    b1_p = jnp.zeros((1, h_pad), f32).at[0, :hidden].set(b1.astype(f32))
    w2_p = jnp.zeros((h_pad, c_pad), bf16).at[:hidden, :num_classes].set(
        w2.astype(bf16))
    # Padded class lanes get a very negative bias so log_softmax ignores them.
    b2_p = jnp.full((1, c_pad), -1e30, f32).at[0, :num_classes].set(b2.astype(f32))

    tn = min(n_pad, 512)
    # Keep Y resident in VMEM unless it would be too large (v5e 16 MiB scoped).
    y1_res = n_pad * h_pad * 2 <= 4 * 1024 * 1024
    y2_res = n_pad * c_pad * 2 <= 4 * 1024 * 1024

    # ---- layer 1: h = relu(norm_adj @ (X W1) + b1) -------------------------
    y1 = _feature_transform(x_p, dinv, w1_p, tn=tn, out_dtype=bf16)
    h = _gcn_aggregate(adj_p, y1, dinv, b1_p, tm=tm, tk=tk,
                       epilogue="relu", out_dtype=bf16, y_resident=y1_res)
    # dropout (inference mode) -> identity
    # ---- layer 2: out = log_softmax(norm_adj @ (H W2) + b2) ----------------
    y2 = _feature_transform(h, dinv, w2_p, tn=tn, out_dtype=bf16)
    out = _gcn_aggregate(adj_p, y2, dinv, b2_p, tm=tm, tk=tk,
                         epilogue="log_softmax", out_dtype=f32,
                         y_resident=y2_res)
    return out[:n, :num_classes]


if __name__ == "__main__":
    # Small, TPU-friendly synthetic problem.
    N = 8                  # number of nodes
    F_IN = 4               # num_node_features
    HIDDEN = 16            # hidden units of gcn1
    NUM_CLASSES = 4

    key = jax.random.PRNGKey(0)
    k_adj, k_x, k_w1, k_b1, k_w2, k_b2 = jax.random.split(key, 6)

    # Symmetric 0/1 adjacency with self-loops.
    a = (jax.random.uniform(k_adj, (N, N)) > 0.5).astype(jnp.float32)
    adj = jnp.clip(a + a.T + jnp.eye(N, dtype=jnp.float32), 0.0, 1.0)
    deg = jnp.sum(adj, axis=1)                       # node degrees

    x = jax.random.normal(k_x, (N, F_IN), dtype=jnp.float32)
    w1 = jax.random.uniform(k_w1, (F_IN, HIDDEN), minval=-0.5, maxval=0.5,
                            dtype=jnp.float32)
    b1 = jax.random.uniform(k_b1, (HIDDEN,), minval=-0.1, maxval=0.1,
                            dtype=jnp.float32)
    w2 = jax.random.uniform(k_w2, (HIDDEN, NUM_CLASSES), minval=-0.5, maxval=0.5,
                            dtype=jnp.float32)
    b2 = jax.random.uniform(k_b2, (NUM_CLASSES,), minval=-0.1, maxval=0.1,
                            dtype=jnp.float32)

    out = gcn_model_forward(adj, x, deg, w1, b1, w2, b2)
    out = jax.block_until_ready(out)
    assert out.shape == (N, NUM_CLASSES)

    # Pure-JAX f32 reference.
    dinv = jax.lax.rsqrt(deg)
    norm_adj = adj * dinv[:, None] * dinv[None, :]
    h_ref = jnp.maximum(norm_adj @ (x @ w1) + b1, 0.0)
    logits = norm_adj @ (h_ref @ w2) + b2
    ref = jax.nn.log_softmax(logits, axis=1)

    err = float(jnp.max(jnp.abs(out - ref)))
    # Tolerance documents the bf16 feature/activation path (adj stream is an
    # exact int8 0/1; all accumulation is f32 on the MXU).
    assert err < 1e-1, f"mismatch vs reference: max abs err = {err}"

    print("KERNEL_OK")
</pallas_src>

<mosaic_0001>
module attributes {stable_mosaic.version = 11 : i64} {
  func.func @_transform_kernel(%arg0: i32, %arg1: memref<128x128xbf16, #tpu.memory_space<vmem>>, %arg2: memref<128x1xf32, #tpu.memory_space<vmem>>, %arg3: memref<128x128xbf16, #tpu.memory_space<vmem>>, %arg4: memref<128x128xbf16, #tpu.memory_space<vmem>>) attributes {dimension_semantics = [#tpu.dimension_semantics<parallel>], iteration_bounds = array<i64: 1>, scalar_prefetch = 0 : i64, scratch_operands = 0 : i64, tpu.core_type = #tpu.core_type<tc>, window_params = [{transform_indices = @transform_0, window_bounds = array<i64: 128, 128>}, {transform_indices = @transform_1, window_bounds = array<i64: 128, 1>}, {pipeline_mode = #tpu.pipeline_mode<synchronous>, transform_indices = @transform_2, window_bounds = array<i64: 128, 128>}, {transform_indices = @transform_3, window_bounds = array<i64: 128, 128>}]} {
    %c0 = arith.constant 0 : index
    %c0_0 = arith.constant 0 : index
    %0 = vector.load %arg1[%c0, %c0_0] : memref<128x128xbf16, #tpu.memory_space<vmem>>, vector<128x128xbf16>
    %c0_1 = arith.constant 0 : index
    %c0_2 = arith.constant 0 : index
    %1 = vector.load %arg3[%c0_1, %c0_2] : memref<128x128xbf16, #tpu.memory_space<vmem>>, vector<128x128xbf16>
    %cst = arith.constant dense<0.000000e+00> : vector<128x128xf32>
    %2 = tpu.matmul %0, %1, %cst {dimension_numbers = #tpu.dot_dimension_numbers<[1], [0], [0], [1], [0, 0, 1, 1], [], []>} : vector<128x128xbf16>, vector<128x128xbf16>, vector<128x128xf32> -> vector<128x128xf32>
    %c0_3 = arith.constant 0 : index
    %c0_4 = arith.constant 0 : index
    %3 = vector.load %arg2[%c0_3, %c0_4] : memref<128x1xf32, #tpu.memory_space<vmem>>, vector<128x1xf32>
    %4 = vector.broadcast %3 : vector<128x1xf32> to vector<128x128xf32>
    %5 = arith.mulf %2, %4 : vector<128x128xf32>
    %6 = arith.truncf %5 : vector<128x128xf32> to vector<128x128xbf16>
    %c0_5 = arith.constant 0 : index
    %c0_6 = arith.constant 0 : index
    %7 = vector.load %arg4[%c0_5, %c0_6] : memref<128x128xbf16, #tpu.memory_space<vmem>>, vector<128x128xbf16>
    tpu.vector_store %arg4[%c0_5, %c0_6], %6 {strides = array<i32>} : memref<128x128xbf16, #tpu.memory_space<vmem>>, vector<128x128xbf16>,
    return
  }
  func.func @transform_0(%arg0: i32) -> (i32, i32) {
    %c0_i32 = arith.constant 0 : i32
    %c0_i32_0 = arith.constant 0 : i32
    return %arg0, %c0_i32 : i32, i32
  }
  func.func @transform_1(%arg0: i32) -> (i32, i32) {
    %c0_i32 = arith.constant 0 : i32
    %c0_i32_0 = arith.constant 0 : i32
    return %arg0, %c0_i32 : i32, i32
  }
  func.func @transform_2(%arg0: i32) -> (i32, i32) {
    %c0_i32 = arith.constant 0 : i32
    %c0_i32_0 = arith.constant 0 : i32
    %c0_i32_1 = arith.constant 0 : i32
    return %c0_i32, %c0_i32_0 : i32, i32
  }
  func.func @transform_3(%arg0: i32) -> (i32, i32) {
    %c0_i32 = arith.constant 0 : i32
    %c0_i32_0 = arith.constant 0 : i32
    return %arg0, %c0_i32 : i32, i32
  }
}

</mosaic_0001>

<bundles_post_ra>
// kernel: tpu_custom_call.1
= control target key start
LH: loop header
LB: loop body
LE: loop exit
PB: predicated region body
PF: predicated region fallthrough
CT: control target
= control target key end

     0   :  { %v652_v2 = vmov 0   ;;  %s775_s0 = inlined_call_operand.vmem [shape: bf16[128,128], index: 0, kind: input, shape index: {}]   ;;  %s776_s1 = inlined_call_operand.vmem [shape: f32[128,1], index: 1, kind: input, shape index: {}]   ;;  %s777_s2 = inlined_call_operand.vmem [shape: bf16[128,128], index: 2, kind: input, shape index: {}]   ;;  %s778_s3 = inlined_call_operand.hbm [shape: bf16[128,128], index: 3, kind: output, shape index: {}]  }
   0x1   :  { %v614_v0 = vld [vmem:[%s777_s2 + $0x38] sm:$0xff]   ;;  %v615_v1 = vld [vmem:[%s777_s2 + $0x30] sm:$0xff]   ;;  %613 = vset.pattern.permute.xlu1 %v652_v2  ;;  %612 = vset.pattern.permute.xlu0 %v652_v2  ;;  %v616_v3 = vld [vmem:[%s777_s2 + $0x28] sm:$0xff]  }
   0x2   :  { %560 = vmatprep.subr.bf16.mxu0 %v614_v0  ;;  %592 = vmatprep.subr.bf16.mxu1 %v614_v0  ;;  %v617_v4 = vld [vmem:[%s777_s2 + $0x20] sm:$0xff]   ;;  %v618_v7 = vld [vmem:[%s777_s2 + $0x18] sm:$0xff]   ;;  %v619_v8 = vld [vmem:[%s777_s2 + $0x10] sm:$0xff]  }
   0x3   :  { %561 = vmatpush3.bf16.msra.mxu0 %v614_v0  ;;  %600 = vmatpush3.bf16.msra.mxu1 %v614_v0  ;;  %v622_v5 = vld [vmem:[%s775_s0] sm:$0xff]   ;;  %v243_v9 = vld [vmem:[%s776_s1 + $0x10] sm:$0xff]  ;;  %v244_v11 = vld [vmem:[%s776_s1 + $0x18] sm:$0xff] }
   0x4   :  { %562 = vmatprep.subr.bf16.mxu0 %v615_v1  ;;  %593 = vmatprep.subr.bf16.mxu1 %v615_v1  ;;  %v623_v6 = vld [vmem:[%s775_s0 + $0x20] sm:$0xff]   ;;  %v242_v12 = vld [vmem:[%s776_s1 + $0x8] sm:$0xff] }
   0x5   :  { %576 = vmatprep.mubr.bf16.mxu0 %v622_v5  ;;  %584 = vmatprep.mubr.bf16.mxu1 %v623_v6  ;;  %v241_v10 = vld [vmem:[%s776_s1] sm:$0xff]  ;;  %v620_v13 = vld [vmem:[%s777_s2 + $0x8] sm:$0xff]  }
   0x6   :  { %269 = vperm.xlu1 %613, %v243_v9   ;;  %259 = vperm.xlu0 %612, %v241_v10  }
   0x7   :  { %563 = vmatpush3.bf16.msra.mxu0 %v615_v1  ;;  %601 = vmatpush3.bf16.msra.mxu1 %v615_v1 }
   0x8   :  { %564 = vmatprep.subr.bf16.mxu0 %v616_v3  ;;  %594 = vmatprep.subr.bf16.mxu1 %v616_v3 }
   0xa   :  { %274 = vperm.xlu1 %613, %v244_v11   ;;  %264 = vperm.xlu0 %612, %v242_v12  }
   0xb   :  { %565 = vmatpush3.bf16.msra.mxu0 %v616_v3  ;;  %602 = vmatpush3.bf16.msra.mxu1 %v616_v3 }
   0xc   :  { %566 = vmatprep.subr.bf16.mxu0 %v617_v4  ;;  %595 = vmatprep.subr.bf16.mxu1 %v617_v4 }
   0xf   :  { %567 = vmatpush3.bf16.msra.mxu0 %v617_v4  ;;  %603 = vmatpush3.bf16.msra.mxu1 %v617_v4 }
  0x10   :  { %568 = vmatprep.subr.bf16.mxu0 %v618_v7  ;;  %596 = vmatprep.subr.bf16.mxu1 %v618_v7 }
  0x13   :  { %569 = vmatpush3.bf16.msra.mxu0 %v618_v7  ;;  %604 = vmatpush3.bf16.msra.mxu1 %v618_v7 }
  0x14   :  { %570 = vmatprep.subr.bf16.mxu0 %v619_v8  ;;  %597 = vmatprep.subr.bf16.mxu1 %v619_v8 }
  0x15   :  { %8 = vsyncpa [#allocation3], 0  ;;  %v246_v14 = vld [vmem:[%s776_s1 + $0x28] sm:$0xff]  ;;  %v245_v15 = vld [vmem:[%s776_s1 + $0x20] sm:$0xff] }
  0x16   :  { %v621_v16 = vld [vmem:[%s777_s2] sm:$0xff]   ;;  %284 = vperm.xlu1 %613, %v246_v14   ;;  %279 = vperm.xlu0 %612, %v245_v15   ;;  %v248_v17 = vld [vmem:[%s776_s1 + $0x38] sm:$0xff]  ;;  %v247_v18 = vld [vmem:[%s776_s1 + $0x30] sm:$0xff] }
  0x17   :  { %571 = vmatpush3.bf16.msra.mxu0 %v619_v8  ;;  %605 = vmatpush3.bf16.msra.mxu1 %v619_v8  ;;  %v624_v19 = vld [vmem:[%s775_s0 + $0x8] sm:$0xff]   ;;  %v249_v22 = vld [vmem:[%s776_s1 + $0x40] sm:$0xff]  ;;  %v626_v23 = vld [vmem:[%s775_s0 + $0x10] sm:$0xff]  }
  0x18   :  { %572 = vmatprep.subr.bf16.mxu0 %v620_v13  ;;  %598 = vmatprep.subr.bf16.mxu1 %v620_v13  ;;  %v625_v20 = vld [vmem:[%s775_s0 + $0x28] sm:$0xff]   ;;  %v627_v24 = vld [vmem:[%s775_s0 + $0x30] sm:$0xff]   ;;  %v252_v25 = vld [vmem:[%s776_s1 + $0x58] sm:$0xff] }
  0x19   :  { %v250_v21 = vld [vmem:[%s776_s1 + $0x48] sm:$0xff]  ;;  %v251_v26 = vld [vmem:[%s776_s1 + $0x50] sm:$0xff]  ;;  %v628_v27 = vld [vmem:[%s775_s0 + $0x18] sm:$0xff]  }
  0x1a   :  { %294 = vperm.xlu1 %613, %v248_v17   ;;  %289 = vperm.xlu0 %612, %v247_v18   ;;  %v629_v28 = vld [vmem:[%s775_s0 + $0x38] sm:$0xff]   ;;  %v254_v29 = vld [vmem:[%s776_s1 + $0x68] sm:$0xff]  ;;  %v253_v30 = vld [vmem:[%s776_s1 + $0x60] sm:$0xff]  ;;  %s653_s0 = smov [#allocation2]  }
  0x1b   :  { %573 = vmatpush3.bf16.msra.mxu0 %v620_v13  ;;  %606 = vmatpush3.bf16.msra.mxu1 %v620_v13  ;;  %v256_v31 = vld [vmem:[%s776_s1 + $0x78] sm:$0xff]  ;;  %v255_v32 = vld [vmem:[%s776_s1 + $0x70] sm:$0xff]  ;;  %s438_s1 = sshll.u32 %s653_s0, 4  ;;  %s439_s1 = int_to_ptr.vmem [resolvable:$true] %s438_s1 }
  0x1c   :  { %574 = vmatprep.subr.bf16.mxu0 %v621_v16  ;;  %599 = vmatprep.subr.bf16.mxu1 %v621_v16  ;;  %s630_s21 = scalar_lea.vmem %s439_s1, 1024  ;;  %p635_p1 = scmp.lt.s32.totalorder %s439_s1, %s439_s1 }
  0x1d   :  { %p631_p0 = scmp.ne.s32.totalorder %s439_s1, %s630_s21  ;;  %p636_p2 = scmp.lt.s32.totalorder %s630_s21, %s630_s21 }
  0x1e   :  { %304 = vperm.xlu1 %613, %v250_v21   ;;  %299 = vperm.xlu0 %612, %v249_v22  }
  0x1f   :  { %575 = vmatpush3.bf16.msra.mxu0 %v621_v16  ;;  %607 = vmatpush3.bf16.msra.mxu1 %v621_v16  ;;  %p637_p3 = por %p636_p2, %p635_p1 }
  0x21   :  { %p638_p4 = pnand %p637_p3, %p631_p0 }
  0x22   :  { %577 = vmatmul.mubr.bf16.vlgmr.msra.gmra.mxu0 %v624_v19  ;;  %585 = vmatmul.mubr.bf16.vlgmr.msra.gmra.mxu1 %v625_v20 }
  0x23   :  { %580 = vmatprep.mubr.bf16.mxu0 %v626_v23  ;;  %588 = vmatprep.mubr.bf16.mxu1 %v627_v24 }
  0x24   :  { %314 = vperm.xlu1 %613, %v252_v25   ;;  %309 = vperm.xlu0 %612, %v251_v26  }
  0x28   :  { %324 = vperm.xlu1 %613, %v254_v29   ;;  %319 = vperm.xlu0 %612, %v253_v30  }
  0x2a   :  { %581 = vmatmul.mubr.bf16.gmra.mxu0 %v628_v27  ;;  %589 = vmatmul.mubr.bf16.gmra.mxu1 %v629_v28 }
  0x2c   :  { %334 = vperm.xlu1 %613, %v256_v31   ;;  %329 = vperm.xlu0 %612, %v255_v32  }
  0x81   :  { %v270_v33 = vpop.permute.xlu1 %269  ;;  %v260_v34 = vpop.permute.xlu0 %259 }
  0x85   :  { %v275_v35 = vpop.permute.xlu1 %274  ;;  %v265_v36 = vpop.permute.xlu0 %264 }
  0x91   :  { %v285_v37 = vpop.permute.xlu1 %284  ;;  %v280_v38 = vpop.permute.xlu0 %279 }
  0x95   :  { %v295_v39 = vpop.permute.xlu1 %294  ;;  %v290_v40 = vpop.permute.xlu0 %289 }
  0x99   :  { %v305_v41 = vpop.permute.xlu1 %304  ;;  %v300_v42 = vpop.permute.xlu0 %299 }
  0x9f   :  { %v315_v43 = vpop.permute.xlu1 %314  ;;  %v310_v44 = vpop.permute.xlu0 %309 }
  0xa3   :  { %v325_v51 = vpop.permute.xlu1 %324  ;;  %v320_v52 = vpop.permute.xlu0 %319 }
  0xa7   :  { %v335_v7 = vpop.permute.xlu1 %334  ;;  %v330_v8 = vpop.permute.xlu0 %329 }
  0xe2   :  { %v578_v45 = vpop.f32.mrf.mxu0  ;;  %v586_v46 = vpop.f32.mrf.mxu1 }
  0xe3   :  { %v339_v53 = vmul.f32 %v578_v45, %v270_v33  ;;  %v347_v54 = vmul.f32 %v586_v46, %v310_v44 }
  0xe4   :  { %v178_v47 = vpop.f32.mrf.mxu0  ;;  %v210_v48 = vpop.f32.mrf.mxu1 }
  0xe5   :  { %v337_v57 = vmul.f32 %v260_v34, %v178_v47  ;;  %v345_v58 = vmul.f32 %v300_v42, %v210_v48 }
  0xe6   :  { %v579_v49 = vpop.f32.mrf.mxu0  ;;  %v587_v50 = vpop.f32.mrf.mxu1 }
  0xe7   :  { %v340_v55 = vmul.f32 %v579_v49, %v275_v35  ;;  %v348_v56 = vmul.f32 %v587_v50, %v315_v43 }
  0xe8   :  { %v181_v59 = vpop.f32.mrf.mxu0  ;;  %v213_v60 = vpop.f32.mrf.mxu1 }
  0xe9   :  { %v505_v61 = vpack.c.bf16 %v340_v55, %v339_v53  ;;  %v525_v62 = vpack.c.bf16 %v348_v56, %v347_v54  ;;  %v338_v63 = vmul.f32 %v265_v36, %v181_v59  ;;  %v346_v0 = vmul.f32 %v305_v41, %v213_v60 }
  0xea   :  { %v582_v1 = vpop.f32.mrf.mxu0  ;;  %v590_v2 = vpop.f32.mrf.mxu1 }
  0xeb   :  { %537 = vst [vmem:[#allocation2 + $0x8] sm:$0xff] %v505_v61   ;;  %541 = vst [vmem:[#allocation2 + $0x28] sm:$0xff] %v525_v62   ;;  %v500_v3 = vpack.c.bf16 %v338_v63, %v337_v57  ;;  %v520_v4 = vpack.c.bf16 %v346_v0, %v345_v58  ;;  %v343_v11 = vmul.f32 %v582_v1, %v290_v40 }
  0xec   :  { %v194_v5 = vpop.f32.mrf.mxu0  ;;  %v226_v6 = vpop.f32.mrf.mxu1  ;;  %v351_v12 = vmul.f32 %v590_v2, %v330_v8 }
  0xed   :  { %501 = vst [vmem:[#allocation2] sm:$0xff] %v500_v3   ;;  %540 = vst [vmem:[#allocation2 + $0x20] sm:$0xff] %v520_v4   ;;  %v341_v15 = vmul.f32 %v280_v38, %v194_v5  ;;  %v349_v16 = vmul.f32 %v320_v52, %v226_v6 }
  0xee   :  { %v583_v9 = vpop.f32.mrf.mxu0  ;;  %v591_v10 = vpop.f32.mrf.mxu1 }
  0xef   :  { %v344_v13 = vmul.f32 %v583_v9, %v295_v39  ;;  %v352_v14 = vmul.f32 %v591_v10, %v335_v7 }
  0xf0   :  { %v197_v17 = vpop.f32.mrf.mxu0  ;;  %v229_v18 = vpop.f32.mrf.mxu1 }
  0xf1   :  { %v515_v19 = vpack.c.bf16 %v344_v13, %v343_v11  ;;  %v535_v20 = vpack.c.bf16 %v352_v14, %v351_v12  ;;  %v342_v21 = vmul.f32 %v285_v37, %v197_v17  ;;  %v350_v22 = vmul.f32 %v325_v51, %v229_v18 }
  0xf3   :  { %539 = vst [vmem:[#allocation2 + $0x18] sm:$0xff] %v515_v19   ;;  %543 = vst [vmem:[#allocation2 + $0x38] sm:$0xff] %v535_v20   ;;  %v510_v23 = vpack.c.bf16 %v342_v21, %v341_v15  ;;  %v530_v24 = vpack.c.bf16 %v350_v22, %v349_v16 }
  0xf5   :  { %538 = vst [vmem:[#allocation2 + $0x10] sm:$0xff] %v510_v23   ;;  %542 = vst [vmem:[#allocation2 + $0x30] sm:$0xff] %v530_v24  }
  0xf6   :  { %641 = shalt.err (!%p638_p4)
}
  0xf7   :  { %s654_s22 = smov 64   ;;  %s655_s2 = smov 4  }
  0xf8   :  { %444 = dma.vmem_to_hbm [thread:$0]  %s439_s1, 1024, %s778_s3, [#allocation3], %s654_s22, %s654_s22, %s655_s2  }
  0xf9   :  { %650 = dma.done.wait [#allocation3], 1024  }
  0xfa   :  { %651 = vsyncadd [#allocation3], 4294966272 }
  0xfb   :  { %448 = vsyncpa [#allocation3], 1 }

</bundles_post_ra>
